<compile_context>
chip_gen: v5e
topology: v5e:2x2
jax: 0.10.0
libtpu: 0.0.40
codegen_flags: <defaults>
</compile_context>

<pallas_src>
import functools

import jax
import jax.numpy as jnp
from jax import lax
from jax.experimental import pallas as pl
from jax.experimental.pallas import tpu as pltpu


# --------------------------------------------------------------------------- #
# Kernels
# --------------------------------------------------------------------------- #
def _spiel_linear_kernel_f32(x_ref, w_ref, b_ref, o_ref):
    """f32 output: accumulate directly into the k-resident output block."""
    k = pl.program_id(2)

    @pl.when(k == 0)
    def _():
        # Initialize the output block with the (broadcast) bias.
        o_ref[...] = jnp.broadcast_to(b_ref[...], o_ref.shape).astype(o_ref.dtype)

    # x_tile (tm, tk) · W_tile (tn, tk) contracting the K axes -> (tm, tn).
    o_ref[...] += lax.dot_general(
        x_ref[...],
        w_ref[...],
        dimension_numbers=(((1,), (1,)), ((), ())),
        preferred_element_type=jnp.float32,
    )


def _spiel_linear_kernel_acc(x_ref, w_ref, b_ref, o_ref, acc_ref):
    """Non-f32 output: accumulate in an f32 VMEM scratch, cast at the end."""
    k = pl.program_id(2)

    @pl.when(k == 0)
    def _():
        acc_ref[...] = jnp.broadcast_to(b_ref[...], acc_ref.shape).astype(jnp.float32)

    acc_ref[...] += lax.dot_general(
        x_ref[...],
        w_ref[...],
        dimension_numbers=(((1,), (1,)), ((), ())),
        preferred_element_type=jnp.float32,
    )

    @pl.when(k == pl.num_programs(2) - 1)
    def _():
        o_ref[...] = acc_ref[...].astype(o_ref.dtype)


# --------------------------------------------------------------------------- #
# Wrapper
# --------------------------------------------------------------------------- #
def _round_up(x, m):
    return ((x + m - 1) // m) * m


@functools.partial(jax.jit, static_argnames=("tm_max", "tn_max", "tk_max",
                                             "compute_dtype"))
def spiel_sparse_linear(x, base_weight, base_bias, sparse_values, idxs,
                        *, tm_max=256, tn_max=512, tk_max=512,
                        compute_dtype=None):
    """y = x @ (W + scatter(sparse_values at flat idxs)).T + b  via Pallas."""
    orig_shape = x.shape
    N, K = base_weight.shape
    x2d = x.reshape(-1, K)
    M = x2d.shape[0]
    out_dtype = x.dtype

    # ---- Glue (once, plain JAX): merge the SpIEL sparse delta into W. ------ #
    w_eff = (
        base_weight.reshape(-1)
        .at[idxs]
        .add(sparse_values.astype(base_weight.dtype))
        .reshape(N, K)
    )

    if base_bias is None:
        base_bias = jnp.zeros((N,), dtype=base_weight.dtype)
    bias2d = base_bias.reshape(1, N)

    if compute_dtype is not None:
        # e.g. jnp.bfloat16 on v6e/v7x for MXU-peak throughput.
        x2d = x2d.astype(compute_dtype)
        w_eff = w_eff.astype(compute_dtype)

    # ---- Tile selection (large MXU-filling tiles, clamped to problem). ---- #
    tm = min(tm_max, _round_up(M, 8))
    tn = min(tn_max, _round_up(N, 128))
    tk = min(tk_max, _round_up(K, 128))

    Mp, Np, Kp = _round_up(M, tm), _round_up(N, tn), _round_up(K, tk)

    # Zero-pad to tile multiples (zeros contribute nothing to the matmul;
    # padded output rows/cols are sliced off below).
    if (Mp, Kp) != (M, K):
        x2d = jnp.pad(x2d, ((0, Mp - M), (0, Kp - K)))
    if (Np, Kp) != (N, K):
        w_eff = jnp.pad(w_eff, ((0, Np - N), (0, Kp - K)))
    if Np != N:
        bias2d = jnp.pad(bias2d, ((0, 0), (0, Np - N)))

    grid = (Mp // tm, Np // tn, Kp // tk)

    # ---- Kernel variant + scratch. ---------------------------------------- #
    out_is_f32 = jnp.dtype(out_dtype) == jnp.dtype(jnp.float32)
    if out_is_f32:
        kernel = _spiel_linear_kernel_f32
        scratch_shapes = []
    else:
        kernel = _spiel_linear_kernel_acc
        scratch_shapes = [pltpu.VMEM((tm, tn), jnp.float32)]

    # ---- VMEM budget (double-buffered operands) + cost estimate. ---------- #
    it_x = jnp.dtype(x2d.dtype).itemsize
    it_w = jnp.dtype(w_eff.dtype).itemsize
    it_b = jnp.dtype(bias2d.dtype).itemsize
    it_o = jnp.dtype(out_dtype).itemsize
    vmem_need = 2 * (tm * tk * it_x + tn * tk * it_w + tm * tn * it_o
                     + tn * it_b) + tm * tn * 4
    vmem_limit = int(min(max(2 * vmem_need, 32 * 1024 * 1024), 64 * 1024 * 1024))

    cost = pl.CostEstimate(
        flops=2 * M * N * K,
        transcendentals=0,
        bytes_accessed=(x2d.size * it_x + w_eff.size * it_w
                        + bias2d.size * it_b + Mp * Np * it_o),
    )

    out2d = pl.pallas_call(
        kernel,
        out_shape=jax.ShapeDtypeStruct((Mp, Np), out_dtype),
        grid_spec=pltpu.PrefetchScalarGridSpec(
            num_scalar_prefetch=0,
            grid=grid,
            in_specs=[
                pl.BlockSpec((tm, tk), lambda i, j, k: (i, k)),   # x
                pl.BlockSpec((tn, tk), lambda i, j, k: (j, k)),   # merged W+dW
                pl.BlockSpec((1, tn), lambda i, j, k: (0, j)),    # bias
            ],
            out_specs=pl.BlockSpec((tm, tn), lambda i, j, k: (i, j)),
            scratch_shapes=scratch_shapes,
        ),
        compiler_params=pltpu.CompilerParams(
            dimension_semantics=("parallel", "parallel", "arbitrary"),
            vmem_limit_bytes=vmem_limit,
        ),
        cost_estimate=cost,
    )(x2d, w_eff, bias2d)

    out2d = out2d[:M, :N]
    return out2d.reshape(*orig_shape[:-1], N)


# --------------------------------------------------------------------------- #
# Self-test
# --------------------------------------------------------------------------- #
if __name__ == "__main__":
    key = jax.random.PRNGKey(0)
    k_x, k_w, k_b, k_idx, k_dv = jax.random.split(key, 5)

    # Small shapes consistent with the module's forward (nn.Linear-style).
    batch, seq = 2, 8
    in_features, out_features = 256, 128
    keep_ratio = 0.05                       # SparseMaskConfig.keep_ratio
    nnz = int(keep_ratio * out_features * in_features)

    x = jax.random.normal(k_x, (batch, seq, in_features), dtype=jnp.float32)
    base_weight = (
        jax.random.normal(k_w, (out_features, in_features), dtype=jnp.float32)
        * 0.02
    )
    base_bias = jax.random.normal(k_b, (out_features,), dtype=jnp.float32) * 0.1

    # SpIEL 1-D indices (row * in_features + col), unique, deterministic.
    idxs = jax.random.permutation(k_idx, out_features * in_features)[:nnz]
    idxs = jnp.sort(idxs).astype(jnp.int32)
    # Module inits sparse_weights to zeros; use nonzero deterministic values
    # here so the delta path is actually exercised.
    sparse_values = jax.random.normal(k_dv, (nnz,), dtype=jnp.float32) * 0.05

    y = spiel_sparse_linear(x, base_weight, base_bias, sparse_values, idxs)
    y = jax.block_until_ready(y)

    # Pure-JAX reference for correctness.
    delta_ref = (
        jnp.zeros((out_features * in_features,), dtype=jnp.float32)
        .at[idxs]
        .add(sparse_values)
        .reshape(out_features, in_features)
    )
    y_ref = x @ (base_weight + delta_ref).T + base_bias
    assert y.shape == (batch, seq, out_features)
    assert jnp.allclose(y, y_ref, atol=1e-4, rtol=1e-4), "mismatch vs reference"

    # Also exercise a non-tile-friendly shape (cdiv + padding path).
    x_odd = jax.random.normal(k_x, (3, 5, in_features), dtype=jnp.float32)
    y_odd = jax.block_until_ready(
        spiel_sparse_linear(x_odd, base_weight, base_bias, sparse_values, idxs)
    )
    y_odd_ref = x_odd @ (base_weight + delta_ref).T + base_bias
    assert jnp.allclose(y_odd, y_odd_ref, atol=1e-4, rtol=1e-4), "odd-shape mismatch"

    print("KERNEL_OK")
</pallas_src>

<mosaic_0001>
module attributes {stable_mosaic.version = 11 : i64} {
  func.func @_spiel_linear_kernel_f32(%arg0: i32, %arg1: i32, %arg2: i32, %arg3: memref<16x256xf32, #tpu.memory_space<vmem>>, %arg4: memref<128x256xf32, #tpu.memory_space<vmem>>, %arg5: memref<1x128xf32, #tpu.memory_space<vmem>>, %arg6: memref<16x128xf32, #tpu.memory_space<vmem>>) attributes {dimension_semantics = [#tpu.dimension_semantics<parallel>, #tpu.dimension_semantics<parallel>, #tpu.dimension_semantics<arbitrary>], iteration_bounds = array<i64: 1, 1, 1>, scalar_prefetch = 0 : i64, scratch_operands = 0 : i64, tpu.core_type = #tpu.core_type<tc>, window_params = [{transform_indices = @transform_0, window_bounds = array<i64: 16, 256>}, {transform_indices = @transform_1, window_bounds = array<i64: 128, 256>}, {transform_indices = @transform_2, window_bounds = array<i64: 1, 128>}, {transform_indices = @transform_3, window_bounds = array<i64: 16, 128>}]} {
    %c0_i32 = arith.constant 0 : i32
    %0 = arith.cmpi eq, %arg2, %c0_i32 : i32
    %1 = arith.extui %0 : i1 to i32
    %c0_i32_0 = arith.constant 0 : i32
    %2 = arith.cmpi ne, %1, %c0_i32_0 : i32
    scf.if %2 {
      %c0_8 = arith.constant 0 : index
      %c0_9 = arith.constant 0 : index
      %9 = vector.load %arg5[%c0_8, %c0_9] : memref<1x128xf32, #tpu.memory_space<vmem>>, vector<1x128xf32>
      %10 = vector.shape_cast %9 : vector<1x128xf32> to vector<1x128xf32>
      %11 = vector.broadcast %10 : vector<1x128xf32> to vector<16x128xf32>
      %c0_10 = arith.constant 0 : index
      %c0_11 = arith.constant 0 : index
      %12 = vector.load %arg6[%c0_10, %c0_11] : memref<16x128xf32, #tpu.memory_space<vmem>>, vector<16x128xf32>
      tpu.vector_store %arg6[%c0_10, %c0_11], %11 {strides = array<i32>} : memref<16x128xf32, #tpu.memory_space<vmem>>, vector<16x128xf32>,
    } else {
    }
    %c0 = arith.constant 0 : index
    %c0_1 = arith.constant 0 : index
    %3 = vector.load %arg6[%c0, %c0_1] : memref<16x128xf32, #tpu.memory_space<vmem>>, vector<16x128xf32>
    %c0_2 = arith.constant 0 : index
    %c0_3 = arith.constant 0 : index
    %4 = vector.load %arg3[%c0_2, %c0_3] : memref<16x256xf32, #tpu.memory_space<vmem>>, vector<16x256xf32>
    %c0_4 = arith.constant 0 : index
    %c0_5 = arith.constant 0 : index
    %5 = vector.load %arg4[%c0_4, %c0_5] : memref<128x256xf32, #tpu.memory_space<vmem>>, vector<128x256xf32>
    %cst = arith.constant dense<0.000000e+00> : vector<16x128xf32>
    %6 = tpu.matmul %4, %5, %cst {dimension_numbers = #tpu.dot_dimension_numbers<[1], [1], [0], [0], [0, 0, 1, 0], [], []>} : vector<16x256xf32>, vector<128x256xf32>, vector<16x128xf32> -> vector<16x128xf32>
    %7 = arith.addf %3, %6 : vector<16x128xf32>
    %c0_6 = arith.constant 0 : index
    %c0_7 = arith.constant 0 : index
    %8 = vector.load %arg6[%c0_6, %c0_7] : memref<16x128xf32, #tpu.memory_space<vmem>>, vector<16x128xf32>
    tpu.vector_store %arg6[%c0_6, %c0_7], %7 {strides = array<i32>} : memref<16x128xf32, #tpu.memory_space<vmem>>, vector<16x128xf32>,
    return
  }
  func.func @transform_0(%arg0: i32, %arg1: i32, %arg2: i32) -> (i32, i32) {
    %c0_i32 = arith.constant 0 : i32
    return %arg0, %arg2 : i32, i32
  }
  func.func @transform_1(%arg0: i32, %arg1: i32, %arg2: i32) -> (i32, i32) {
    %c0_i32 = arith.constant 0 : i32
    return %arg1, %arg2 : i32, i32
  }
  func.func @transform_2(%arg0: i32, %arg1: i32, %arg2: i32) -> (i32, i32) {
    %c0_i32 = arith.constant 0 : i32
    %c0_i32_0 = arith.constant 0 : i32
    return %c0_i32, %arg1 : i32, i32
  }
  func.func @transform_3(%arg0: i32, %arg1: i32, %arg2: i32) -> (i32, i32) {
    %c0_i32 = arith.constant 0 : i32
    return %arg0, %arg1 : i32, i32
  }
}

</mosaic_0001>

<bundles_post_ra>
// kernel: spiel_sparse_linear.1
= control target key start
LH: loop header
LB: loop body
LE: loop exit
PB: predicated region body
PF: predicated region fallthrough
CT: control target
= control target key end

     0   :  { %s330_s0 = inlined_call_operand.vmem [shape: f32[16,256], index: 0, kind: input, shape index: {}]   ;;  %s331_s1 = inlined_call_operand.vmem [shape: f32[128,256], index: 1, kind: input, shape index: {}]   ;;  %s332_s2 = inlined_call_operand.vmem [shape: f32[1,128], index: 2, kind: input, shape index: {}]   ;;  %s333_s3 = inlined_call_operand.hbm [shape: f32[16,128], index: 3, kind: output, shape index: {}]  }
   0x1   :  { %v61_v0 = vld [vmem:[%s331_s1 + $0xf0] sm:$0xff]  ;;  %v62_v1 = vld [vmem:[%s331_s1 + $0xf8] sm:$0xff]  ;;  %v59_v2 = vld [vmem:[%s331_s1 + $0xe0] sm:$0xff] }
   0x2   :  { %131 = vmatpush.xpose.msra.mxu2 %v61_v0  ;;  %147 = vmatpush.xpose.msra.mxu3 %v62_v1  ;;  %v60_v3 = vld [vmem:[%s331_s1 + $0xe8] sm:$0xff]  ;;  %v57_v4 = vld [vmem:[%s331_s1 + $0xd0] sm:$0xff]  ;;  %v58_v5 = vld [vmem:[%s331_s1 + $0xd8] sm:$0xff] }
   0x3   :  { %63 = vmatpush.xpose.msra.mxu0 %v61_v0  ;;  %86 = vmatpush.xpose.msra.mxu1 %v62_v1 }
   0x6   :  { %132 = vmatpush.xpose.msra.mxu2 %v59_v2  ;;  %148 = vmatpush.xpose.msra.mxu3 %v60_v3 }
   0x7   :  { %64 = vmatpush.xpose.msra.mxu0 %v59_v2  ;;  %87 = vmatpush.xpose.msra.mxu1 %v60_v3 }
   0x8   :  { %8 = vsyncpa [#allocation3], 0  ;;  %v55_v6 = vld [vmem:[%s331_s1 + $0xc0] sm:$0xff]  ;;  %v56_v7 = vld [vmem:[%s331_s1 + $0xc8] sm:$0xff]  ;;  %s193_s4 = smov [#allocation2]   ;;  %s119_s8 = sshll.u32 %s333_s3, 4  ;;  %s120_s8 = int_to_ptr.hbm [resolvable:$true] %s119_s8 }
   0x9   :  { %v53_v8 = vld [vmem:[%s331_s1 + $0xb0] sm:$0xff]  ;;  %v54_v9 = vld [vmem:[%s331_s1 + $0xb8] sm:$0xff]  ;;  %v51_v10 = vld [vmem:[%s331_s1 + $0xa0] sm:$0xff]  ;;  %s117_s5 = sshll.u32 %s193_s4, 4  ;;  %s118_s5 = int_to_ptr.vmem [resolvable:$true] %s117_s5 }
   0xa   :  { %133 = vmatpush.xpose.msra.mxu2 %v57_v4  ;;  %149 = vmatpush.xpose.msra.mxu3 %v58_v5  ;;  %v52_v11 = vld [vmem:[%s331_s1 + $0xa8] sm:$0xff]  ;;  %v49_v12 = vld [vmem:[%s331_s1 + $0x90] sm:$0xff]  ;;  %v50_v13 = vld [vmem:[%s331_s1 + $0x98] sm:$0xff] }
   0xb   :  { %65 = vmatpush.xpose.msra.mxu0 %v57_v4  ;;  %88 = vmatpush.xpose.msra.mxu1 %v58_v5  ;;  %v47_v14 = vld [vmem:[%s331_s1 + $0x80] sm:$0xff]  ;;  %v48_v15 = vld [vmem:[%s331_s1 + $0x88] sm:$0xff]  ;;  %v45_v16 = vld [vmem:[%s331_s1 + $0x70] sm:$0xff] }
   0xc   :  { %v46_v17 = vld [vmem:[%s331_s1 + $0x78] sm:$0xff]  ;;  %v43_v18 = vld [vmem:[%s331_s1 + $0x60] sm:$0xff]  ;;  %v44_v19 = vld [vmem:[%s331_s1 + $0x68] sm:$0xff] }
   0xd   :  { %v41_v20 = vld [vmem:[%s331_s1 + $0x50] sm:$0xff]  ;;  %v42_v21 = vld [vmem:[%s331_s1 + $0x58] sm:$0xff]  ;;  %v39_v22 = vld [vmem:[%s331_s1 + $0x40] sm:$0xff] }
   0xe   :  { %134 = vmatpush.xpose.msra.mxu2 %v55_v6  ;;  %150 = vmatpush.xpose.msra.mxu3 %v56_v7  ;;  %v40_v23 = vld [vmem:[%s331_s1 + $0x48] sm:$0xff]  ;;  %v37_v24 = vld [vmem:[%s331_s1 + $0x30] sm:$0xff]  ;;  %v38_v25 = vld [vmem:[%s331_s1 + $0x38] sm:$0xff] }
   0xf   :  { %66 = vmatpush.xpose.msra.mxu0 %v55_v6  ;;  %89 = vmatpush.xpose.msra.mxu1 %v56_v7  ;;  %v35_v26 = vld [vmem:[%s331_s1 + $0x20] sm:$0xff]  ;;  %v36_v27 = vld [vmem:[%s331_s1 + $0x28] sm:$0xff]  ;;  %v33_v28 = vld [vmem:[%s331_s1 + $0x10] sm:$0xff] }
  0x10   :  { %v34_v29 = vld [vmem:[%s331_s1 + $0x18] sm:$0xff]  ;;  %v31_v30 = vld [vmem:[%s331_s1] sm:$0xff]  ;;  %v32_v31 = vld [vmem:[%s331_s1 + $0x8] sm:$0xff] }
  0x11   :  { %v29_v32 = vld [vmem:[%s330_s0 + $0x10] sm:$0xff]  ;;  %v30_v33 = vld [vmem:[%s330_s0 + $0x18] sm:$0xff]  ;;  %v27_v34 = vld [vmem:[%s330_s0] sm:$0xff] }
  0x12   :  { %135 = vmatpush.xpose.msra.mxu2 %v53_v8  ;;  %151 = vmatpush.xpose.msra.mxu3 %v54_v9  ;;  %v28_v35 = vld [vmem:[%s330_s0 + $0x8] sm:$0xff]  ;;  %v166_v36 = vld [vmem:[%s332_s2] ss:$0 sm:$0xff]  ;;  %s194_s0 = smov 128   ;;  %s195_s2 = smov 8  }
  0x13   :  { %67 = vmatpush.xpose.msra.mxu0 %v53_v8  ;;  %90 = vmatpush.xpose.msra.mxu1 %v54_v9 }
  0x16   :  { %136 = vmatpush.xpose.msra.mxu2 %v51_v10  ;;  %152 = vmatpush.xpose.msra.mxu3 %v52_v11 }
  0x17   :  { %68 = vmatpush.xpose.msra.mxu0 %v51_v10  ;;  %91 = vmatpush.xpose.msra.mxu1 %v52_v11 }
  0x1a   :  { %137 = vmatpush.xpose.msra.mxu2 %v49_v12  ;;  %153 = vmatpush.xpose.msra.mxu3 %v50_v13 }
  0x1b   :  { %69 = vmatpush.xpose.msra.mxu0 %v49_v12  ;;  %92 = vmatpush.xpose.msra.mxu1 %v50_v13 }
  0x1e   :  { %138 = vmatpush.xpose.msra.mxu2 %v47_v14  ;;  %154 = vmatpush.xpose.msra.mxu3 %v48_v15 }
  0x1f   :  { %70 = vmatpush.xpose.msra.mxu0 %v47_v14  ;;  %93 = vmatpush.xpose.msra.mxu1 %v48_v15 }
  0x22   :  { %139 = vmatpush.xpose.msra.mxu2 %v45_v16  ;;  %155 = vmatpush.xpose.msra.mxu3 %v46_v17 }
  0x23   :  { %71 = vmatpush.xpose.msra.mxu0 %v45_v16  ;;  %94 = vmatpush.xpose.msra.mxu1 %v46_v17 }
  0x26   :  { %140 = vmatpush.xpose.msra.mxu2 %v43_v18  ;;  %156 = vmatpush.xpose.msra.mxu3 %v44_v19 }
  0x27   :  { %72 = vmatpush.xpose.msra.mxu0 %v43_v18  ;;  %95 = vmatpush.xpose.msra.mxu1 %v44_v19 }
  0x2a   :  { %141 = vmatpush.xpose.msra.mxu2 %v41_v20  ;;  %157 = vmatpush.xpose.msra.mxu3 %v42_v21 }
  0x2b   :  { %73 = vmatpush.xpose.msra.mxu0 %v41_v20  ;;  %96 = vmatpush.xpose.msra.mxu1 %v42_v21 }
  0x2e   :  { %142 = vmatpush.xpose.msra.mxu2 %v39_v22  ;;  %158 = vmatpush.xpose.msra.mxu3 %v40_v23 }
  0x2f   :  { %74 = vmatpush.xpose.msra.mxu0 %v39_v22  ;;  %97 = vmatpush.xpose.msra.mxu1 %v40_v23 }
  0x32   :  { %143 = vmatpush.xpose.msra.mxu2 %v37_v24  ;;  %159 = vmatpush.xpose.msra.mxu3 %v38_v25 }
  0x33   :  { %75 = vmatpush.xpose.msra.mxu0 %v37_v24  ;;  %98 = vmatpush.xpose.msra.mxu1 %v38_v25 }
  0x36   :  { %144 = vmatpush.xpose.msra.mxu2 %v35_v26  ;;  %160 = vmatpush.xpose.msra.mxu3 %v36_v27 }
  0x37   :  { %76 = vmatpush.xpose.msra.mxu0 %v35_v26  ;;  %99 = vmatpush.xpose.msra.mxu1 %v36_v27 }
  0x3a   :  { %145 = vmatpush.xpose.msra.mxu2 %v33_v28  ;;  %161 = vmatpush.xpose.msra.mxu3 %v34_v29 }
  0x3b   :  { %77 = vmatpush.xpose.msra.mxu0 %v33_v28  ;;  %100 = vmatpush.xpose.msra.mxu1 %v34_v29 }
  0x3e   :  { %146 = vmatpush.xpose.msra.mxu2 %v31_v30  ;;  %162 = vmatpush.xpose.msra.mxu3 %v32_v31 }
  0x3f   :  { %78 = vmatpush.xpose.msra.mxu0 %v31_v30  ;;  %101 = vmatpush.xpose.msra.mxu1 %v32_v31 }
  0x41   :  { %82 = vmatmul.f32.vlgmr.msra.gmra.mxu2 %v29_v32  ;;  %105 = vmatmul.f32.vlgmr.msra.gmra.mxu3 %v30_v33 }
  0x42   :  { %79 = vmatmul.f32.vlgmr.msra.gmra.mxu0 %v27_v34  ;;  %102 = vmatmul.f32.vlgmr.msra.gmra.mxu1 %v28_v35 }
  0xbf   :  { %v80_v37 = vpop.f32.mrf.mxu0  ;;  %v103_v38 = vpop.f32.mrf.mxu1 }
  0xc0   :  { %v104_v39 = vadd.f32 %v103_v38, %v80_v37 }
  0xc2   :  { %v109_v40 = vadd.f32 %v166_v36, %v104_v39 }
  0xc4   :  { %v83_v41 = vpop.f32.mrf.mxu2  ;;  %111 = vst [vmem:[#allocation2] sm:$0xff] %v109_v40  ;;  %v106_v42 = vpop.f32.mrf.mxu3 }
  0xc5   :  { %v107_v43 = vadd.f32 %v106_v42, %v83_v41 }
  0xc7   :  { %v110_v44 = vadd.f32 %v166_v36, %v107_v43 }
  0xc9   :  { %112 = vst [vmem:[#allocation2 + $0x8] sm:$0xff] %v110_v44 }
  0xca   :  { %125 = dma.vmem_to_hbm [thread:$0]  %s118_s5, 256, %s120_s8, [#allocation3], %s194_s0, %s194_s0, %s195_s2  }
  0xcb   :  { %191 = dma.done.wait [#allocation3], 256  }
  0xcc   :  { %192 = vsyncadd [#allocation3], 4294967040 }
  0xcd   :  { %130 = vsyncpa [#allocation3], 1 }

</bundles_post_ra>
